<compile_context>
chip_gen: v6e
topology: v6e:2x2x1
jax: 0.10.0
libtpu: 0.0.40
codegen_flags: <defaults>
</compile_context>

<pallas_src>
import jax
import jax.numpy as jnp
from jax import lax
from jax.experimental import pallas as pl
from jax.experimental.pallas import tpu as pltpu


def _critic_kernel(x_ref, w1_ref, b1_ref, w2_ref, b2_ref, o_ref):
    x = x_ref[...]                      # (B, F)  f32, VMEM
    w1 = w1_ref[...]                    # (HH, F) f32, VMEM (PyTorch layout)

    # fc1: x @ w1^T  -> (B, HH). Contract last dims of both (trans_b form),
    # handled natively by the MXU — no in-kernel transpose.
    h1 = lax.dot_general(
        x, w1,
        dimension_numbers=(((1,), (1,)), ((), ())),
        preferred_element_type=jnp.float32,
    )
    h1 = jnp.maximum(h1 + b1_ref[...], 0.0)          # bias (1, HH) broadcast + relu

    # fc2 as VPU multiply + XLU lane-reduce (N=1 matmul would badly underfill
    # the MXU and pay the result-FIFO drain).
    b2 = b2_ref[0, 0]                                 # scalar from SMEM
    z = jnp.sum(h1 * w2_ref[...], axis=-1, keepdims=True) + b2   # (B, 1)

    # PyTorch softplus (beta=1, threshold=20): identity for z > 20.
    sp = jnp.where(z > 20.0, z, jnp.log1p(jnp.exp(jnp.minimum(z, 20.0))))

    # mean over the (B, 1) result. (Static B — valid because the batch axis
    # is NOT tiled over a grid here.)
    batch = z.shape[0]
    o_ref[...] = jnp.sum(sp, axis=0, keepdims=True) * (1.0 / float(batch))


def critic_forward(x, w1, b1, w2, b2):
    """x: (B, F); w1: (HH, F); b1: (HH,); w2: (1, HH); b2: (1,).

    Weights are consumed in their native PyTorch nn.Linear layout — no
    transposes or dtype casts in the wrapper (only free metadata reshapes of
    the 1-D biases). Returns a scalar.
    """
    B, F = x.shape
    HH = w1.shape[0]

    b1r = b1.reshape(1, HH)     # free reshape, lane-major bias row
    b2r = b2.reshape(1, 1)      # scalar -> SMEM

    out = pl.pallas_call(
        _critic_kernel,
        out_shape=jax.ShapeDtypeStruct((1, 1), jnp.float32),
        in_specs=[
            pl.BlockSpec(memory_space=pltpu.MemorySpace.VMEM),   # x    (B, F)
            pl.BlockSpec(memory_space=pltpu.MemorySpace.VMEM),   # w1   (HH, F)
            pl.BlockSpec(memory_space=pltpu.MemorySpace.VMEM),   # b1   (1, HH)
            pl.BlockSpec(memory_space=pltpu.MemorySpace.VMEM),   # w2   (1, HH)
            pl.BlockSpec(memory_space=pltpu.MemorySpace.SMEM),   # b2   (1, 1)
        ],
        out_specs=pl.BlockSpec(memory_space=pltpu.MemorySpace.VMEM),
    )(x, w1, b1r, w2, b2r)
    return out[0, 0]

# TODO(synk): if the batch dimension is ever scaled up, tile it over a grid
# (TB >= 512) with partial softplus sums and divide by the TOTAL batch at the
# finalize step (the in-kernel static divide above would become a per-block
# mean under tiling).


def _ref_forward(x, w1, b1, w2, b2):
    h1 = jnp.maximum(x @ w1.T + b1, 0.0)
    z = h1 @ w2.T + b2
    sp = jnp.where(z > 20.0, z, jnp.log1p(jnp.exp(jnp.minimum(z, 20.0))))
    return jnp.mean(sp)


if __name__ == "__main__":
    # Small shapes consistent with the module: h=16 -> h**2=256 features, hh=32
    h, hh, batch = 16, 32, 8
    feat = h * h

    key = jax.random.PRNGKey(0)
    kx, kw1, kb1, kw2, kb2 = jax.random.split(key, 5)

    x = jax.random.normal(kx, (batch, feat), dtype=jnp.float32)

    # Deterministic PyTorch-style uniform(-1/sqrt(fan_in), 1/sqrt(fan_in)) init
    bound1 = 1.0 / (feat ** 0.5)
    w1 = jax.random.uniform(kw1, (hh, feat), minval=-bound1, maxval=bound1,
                            dtype=jnp.float32)
    b1 = jax.random.uniform(kb1, (hh,), minval=-bound1, maxval=bound1,
                            dtype=jnp.float32)
    bound2 = 1.0 / (hh ** 0.5)
    w2 = jax.random.uniform(kw2, (1, hh), minval=-bound2, maxval=bound2,
                            dtype=jnp.float32)
    b2 = jax.random.uniform(kb2, (1,), minval=-bound2, maxval=bound2,
                            dtype=jnp.float32)

    out = critic_forward(x, w1, b1, w2, b2)
    jax.block_until_ready(out)

    ref = _ref_forward(x, w1, b1, w2, b2)
    assert jnp.allclose(out, ref, rtol=1e-5, atol=1e-5), (out, ref)

    print("KERNEL_OK")
</pallas_src>

<mosaic_0001>
module attributes {stable_mosaic.version = 11 : i64} {
  func.func @_critic_kernel(%arg0: memref<8x256xf32, #tpu.memory_space<vmem>>, %arg1: memref<32x256xf32, #tpu.memory_space<vmem>>, %arg2: memref<1x32xf32, #tpu.memory_space<vmem>>, %arg3: memref<1x32xf32, #tpu.memory_space<vmem>>, %arg4: memref<1x1xf32, #tpu.memory_space<smem>>, %arg5: memref<1x1xf32, #tpu.memory_space<vmem>>) attributes {dimension_semantics = [], scalar_prefetch = 0 : i64, scratch_operands = 0 : i64, tpu.core_type = #tpu.core_type<tc>} {
    %c0 = arith.constant 0 : index
    %c0_0 = arith.constant 0 : index
    %0 = vector.load %arg0[%c0, %c0_0] : memref<8x256xf32, #tpu.memory_space<vmem>>, vector<8x256xf32>
    %c0_1 = arith.constant 0 : index
    %c0_2 = arith.constant 0 : index
    %1 = vector.load %arg1[%c0_1, %c0_2] : memref<32x256xf32, #tpu.memory_space<vmem>>, vector<32x256xf32>
    %cst = arith.constant dense<0.000000e+00> : vector<8x32xf32>
    %2 = tpu.matmul %0, %1, %cst {dimension_numbers = #tpu.dot_dimension_numbers<[1], [1], [0], [0], [0, 0, 1, 0], [], []>} : vector<8x256xf32>, vector<32x256xf32>, vector<8x32xf32> -> vector<8x32xf32>
    %c0_3 = arith.constant 0 : index
    %c0_4 = arith.constant 0 : index
    %3 = vector.load %arg2[%c0_3, %c0_4] : memref<1x32xf32, #tpu.memory_space<vmem>>, vector<1x32xf32>
    %4 = vector.broadcast %3 : vector<1x32xf32> to vector<8x32xf32>
    %5 = arith.addf %2, %4 : vector<8x32xf32>
    %cst_5 = arith.constant 0.000000e+00 : f32
    %6 = vector.broadcast %cst_5 : f32 to vector<8x32xf32>
    %7 = arith.maximumf %5, %6 : vector<8x32xf32>
    %c0_6 = arith.constant 0 : index
    %c0_7 = arith.constant 0 : index
    %8 = memref.load %arg4[%c0_6, %c0_7] : memref<1x1xf32, #tpu.memory_space<smem>>
    %c0_8 = arith.constant 0 : index
    %c0_9 = arith.constant 0 : index
    %9 = vector.load %arg3[%c0_8, %c0_9] : memref<1x32xf32, #tpu.memory_space<vmem>>, vector<1x32xf32>
    %10 = vector.broadcast %9 : vector<1x32xf32> to vector<8x32xf32>
    %11 = arith.mulf %7, %10 : vector<8x32xf32>
    %cst_10 = arith.constant dense<0.000000e+00> : vector<8xf32>
    %12 = vector.multi_reduction <add>, %11, %cst_10 [1] : vector<8x32xf32> to vector<8xf32>
    %13 = vector.shape_cast %12 : vector<8xf32> to vector<8x1xf32>
    %14 = vector.broadcast %8 : f32 to vector<8x1xf32>
    %15 = arith.addf %13, %14 : vector<8x1xf32>
    %cst_11 = arith.constant 2.000000e+01 : f32
    %16 = vector.broadcast %cst_11 : f32 to vector<8x1xf32>
    %17 = arith.cmpf ogt, %15, %16 : vector<8x1xf32>
    %cst_12 = arith.constant 2.000000e+01 : f32
    %18 = vector.broadcast %cst_12 : f32 to vector<8x1xf32>
    %19 = arith.minimumf %15, %18 : vector<8x1xf32>
    %20 = math.exp %19 : vector<8x1xf32>
    %21 = math.log1p %20 : vector<8x1xf32>
    %22 = arith.select %17, %15, %21 : vector<8x1xi1>, vector<8x1xf32>
    %cst_13 = arith.constant dense<0.000000e+00> : vector<1xf32>
    %23 = vector.multi_reduction <add>, %22, %cst_13 [0] : vector<8x1xf32> to vector<1xf32>
    %24 = vector.shape_cast %23 : vector<1xf32> to vector<1x1xf32>
    %cst_14 = arith.constant 1.250000e-01 : f32
    %25 = vector.broadcast %cst_14 : f32 to vector<1x1xf32>
    %26 = arith.mulf %24, %25 : vector<1x1xf32>
    %c0_15 = arith.constant 0 : index
    %c0_16 = arith.constant 0 : index
    %27 = vector.load %arg5[%c0_15, %c0_16] : memref<1x1xf32, #tpu.memory_space<vmem>>, vector<1x1xf32>
    tpu.vector_store %arg5[%c0_15, %c0_16], %26 {strides = array<i32>} : memref<1x1xf32, #tpu.memory_space<vmem>>, vector<1x1xf32>,
    return
  }
}

</mosaic_0001>

<bundles_post_ra>
// kernel: tpu_custom_call.1
= control target key start
LH: loop header
LB: loop body
LE: loop exit
PB: predicated region body
PF: predicated region fallthrough
CT: control target
= control target key end

     0   :  { %11 = vsyncpa [#allocation4], 0  ;;  %s320_s0 = inlined_call_operand.hbm [shape: f32[8,256], index: 0, kind: input, shape index: {}]   ;;  %s321_s1 = inlined_call_operand.hbm [shape: f32[32,256], index: 1, kind: input, shape index: {}]   ;;  %s322_s2 = inlined_call_operand.vmem [shape: f32[1,32], index: 2, kind: input, shape index: {}]   ;;  %s323_s3 = inlined_call_operand.vmem [shape: f32[1,32], index: 3, kind: input, shape index: {}]   ;;  %s324_s4 = inlined_call_operand.<no memory space> [shape: f32[1,1], index: 4, kind: input, shape index: {}]   ;;  %s325_s5 = inlined_call_operand.hbm [shape: f32[1,1], index: 5, kind: output, shape index: {}]  }
   0x1   :  { %12 = vsyncpa [#allocation7], 0 }
   0x2   :  { %13 = vsyncpa [#allocation5], 0  ;;  %s267_s18 = smov [#allocation3]   ;;  %s268_s20 = smov [#allocation6]  }
   0x3   :  { %s20_s19 = sshll.u32 %s267_s18, 4  ;;  %s29_s21 = sshll.u32 %s268_s20, 4  ;;  %s21_s19 = int_to_ptr.vmem [resolvable:$true] %s20_s19  ;;  %s30_s21 = int_to_ptr.vmem [resolvable:$true] %s29_s21 }
   0x4   :  { %s209_s22 = scalar_lea.vmem %s21_s19, 256  ;;  %p214_p1 = scmp.lt.s32.totalorder %s21_s19, %s21_s19 }
   0x5   :  { %p210_p0 = scmp.ne.s32.totalorder %s21_s19, %s209_s22  ;;  %p215_p2 = scmp.lt.s32.totalorder %s209_s22, %s209_s22 }
   0x7   :  { %p216_p3 = por %p215_p2, %p214_p1 }
   0x9   :  { %p217_p4 = pnand %p216_p3, %p210_p0 }
   0xb   :  { %220 = shalt.err (!%p217_p4)
}
   0xc   :  { %23 = dma.hbm_to_vmem [thread:$0]  %s320_s0, 256, %s21_s19, [#allocation4]  }
   0xd   :  { %s229_s25 = scalar_lea.vmem %s30_s21, 1024  ;;  %p234_p6 = scmp.lt.s32.totalorder %s30_s21, %s30_s21 }
   0xe   :  { %p230_p5 = scmp.ne.s32.totalorder %s30_s21, %s229_s25  ;;  %p235_p7 = scmp.lt.s32.totalorder %s229_s25, %s229_s25 }
  0x10   :  { %p236_p8 = por %p235_p7, %p234_p6 }
  0x12   :  { %p237_p9 = pnand %p236_p8, %p230_p5 }
  0x14   :  { %240 = shalt.err (!%p237_p9)
}
  0x15   :  { %s269_s26 = smov 256   ;;  %s270_s27 = smov 16  }
  0x16   :  { %35 = dma.hbm_to_vmem [thread:$0]  %s321_s1, 1024, %s30_s21, [#allocation7], %s269_s26, %s269_s26, %s270_s27  }
  0x17   :  { %261 = dma.done.wait [#allocation4], 256  }
  0x18   :  { %262 = vsyncadd [#allocation4], 4294967040 }
  0x19   :  { %263 = dma.done.wait [#allocation7], 1024  }
  0x1a   :  { %264 = vsyncadd [#allocation7], 4294966272  ;;  %v57_v0 = vld [vmem:[#allocation6 + $0x38] sm:$0xff]  ;;  %v56_v1 = vld [vmem:[#allocation6 + $0x30] sm:$0xff]  ;;  %vm145_vm0 = vcmask 261120   ;;  %v149_v18 = vstv %s324_s4  ;;  %vm172_vm3 = vcmask 0  }
  0x1b   :  { %v55_v2 = vld [vmem:[#allocation6 + $0x28] sm:$0xff]  ;;  %89 = vmatprep.subr.mxu0 %v57_v0  ;;  %v49_v3 = vld [vmem:[#allocation3 + $0x8] sm:$0xff]  ;;  %v54_v4 = vld [vmem:[#allocation6 + $0x20] sm:$0xff] }
  0x1c   :  { %90 = vmatpush1.xpose.msra.mxu0 %v56_v1  ;;  %129 = vmatprep.mubr.f32.mxu0 %v49_v3  ;;  %v53_v5 = vld [vmem:[#allocation6 + $0x18] sm:$0xff]  ;;  %v52_v6 = vld [vmem:[#allocation6 + $0x10] sm:$0xff]  ;;  %v51_v7 = vld [vmem:[#allocation6 + $0x8] sm:$0xff] }
  0x1d   :  { %91 = vmatprep.subr.mxu0 %v55_v2  ;;  %v50_v8 = vld [vmem:[#allocation6] sm:$0xff]  ;;  %v48_v9 = vld [vmem:[#allocation3] sm:$0xff] }
  0x1e   :  { %v190_v10 = vld [vmem:[%s322_s2] ss:$0 sm:$0xff]  ;;  %s271_s2 = smov [#allocation8]  }
  0x1f   :  { %v191_v14 = vld [vmem:[%s323_s3] ss:$0 sm:$0xff]  ;;  %s180_s3 = sshll.u32 %s271_s2, 4  ;;  %s181_s3 = int_to_ptr.vmem [resolvable:$true] %s180_s3 }
  0x20   :  { %92 = vmatpush1.xpose.msra.mxu0 %v54_v4  ;;  %s241_s4 = scalar_lea.vmem %s181_s3, 16  ;;  %s245_s9 = scalar_lea.vmem %s181_s3, 32 }
  0x21   :  { %93 = vmatprep.subr.mxu0 %v53_v5  ;;  %p242_p10 = scmp.ne.s32.totalorder %s181_s3, %s241_s4  ;;  %p246_p11 = scmp.lt.s32.totalorder %s181_s3, %s181_s3 }
  0x22   :  { %p247_p12 = scmp.lt.s32.totalorder %s245_s9, %s241_s4 }
  0x24   :  { %94 = vmatpush1.xpose.msra.mxu0 %v52_v6  ;;  %p248_p13 = por %p247_p12, %p246_p11 }
  0x25   :  { %95 = vmatprep.subr.mxu0 %v51_v7 }
  0x26   :  { %p249_p0 = pnand %p248_p13, %p242_p10 }
  0x28   :  { %96 = vmatpush1.xpose.msra.mxu0 %v50_v8 }
  0x2b   :  { %130 = vmatmul.mubr.f32.vlgmr.msra.gmra.mxu0 %v48_v9 }
  0xeb   :  { %v131_v11 = vpop.f32.mrf.mxu0 }
  0xec   :  { %v132_v12 = vadd.f32 %v190_v10, %v131_v11 }
  0xed   :  { %v133_v13 = vpop.f32.mrf.mxu0 }
  0xee   :  { %v135_v15 = vmax.f32 %v132_v12, 0.0 }
  0xf0   :  { %v144_v16 = vmul.f32 %v191_v14, %v135_v15 }
  0xf2   :  { %v146_v17 = vsel %vm145_vm0, %v144_v16, 0.0 }
  0xf3   :  { %147 = vadd.xlane.f32.xlu0 %v146_v17 }
 0x17c   :  { %v148_v19 = vpop.xlane.xlu0 %147 }
 0x17d   :  { %v150_v20 = vadd.f32 %v149_v18, %v148_v19 }
 0x17f   :  { %v152_v21 = vmin.f32 %v150_v20, 20.0  ;;  %vm151_vm2 = vcmp.gt.f32.partialorder %v150_v20, 20.0 }
 0x181   :  { %v153_v22 = vmul.f32 1.442695, %v152_v21 }
 0x183   :  { %197 = vpow2.f32 %v153_v22 }
 0x190   :  { %v198_v23 = vpop.eup %197 }
 0x191   :  { %v155_v24 = vadd.f32 1.0, %v198_v23  ;;  %v158_v25 = vmul.f32 -0.5, %v198_v23  ;;  %v161_v27 = vand.u32 2147483647, %v198_v23 }
 0x193   :  { %199 = vlog2.f32 %v155_v24  ;;  %v159_v26 = vadd.f32 1.0, %v158_v25  ;;  %vm162_vm1 = vcmp.lt.f32.partialorder %v161_v27, 0.0004427343 }
 0x195   :  { %v160_v30 = vmul.f32 %v198_v23, %v159_v26 }
 0x1a0   :  { %v200_v28 = vpop.eup %199 }
 0x1a1   :  { %v157_v29 = vmul.f32 0.6931472, %v200_v28 }
 0x1a3   :  { %v163_v31 = vsel %vm162_vm1, %v160_v30, %v157_v29 }
 0x1a4   :  { %v164_v32 = vsel %vm151_vm2, %v150_v20, %v163_v31 }
 0x1a5   :  { %v165_v33 = vrot.slane %v164_v32, 4 }
 0x1a7   :  { %v166_v34 = vadd.f32 %v165_v33, %v164_v32 }
 0x1a9   :  { %v167_v35 = vrot.slane %v166_v34, 2 }
 0x1ab   :  { %v168_v36 = vadd.f32 %v167_v35, %v166_v34 }
 0x1ad   :  { %v169_v37 = vrot.slane %v168_v36, 1 }
 0x1af   :  { %v170_v38 = vadd.f32 %v169_v37, %v168_v36 }
 0x1b1   :  { %v171_v39 = vmul.f32 0.125, %v170_v38 }
 0x1b3   :  { %173 = vst.msk [vmem:[#allocation8] sm:$0x1] %vm172_vm3, %v171_v39 }
 0x1b4   :  { %252 = shalt.err (!%p249_p0)
}
 0x1b5   :  { %183 = dma.vmem_to_hbm [thread:$0]  %s181_s3, 16, %s325_s5, [#allocation5]  }
 0x1b6   :  { %265 = dma.done.wait [#allocation5], 16  }
 0x1b7   :  { %266 = vsyncadd [#allocation5], 4294967280 }
 0x1b8   :  { %187 = vsyncpa [#allocation4], 1 }
 0x1b9   :  { %188 = vsyncpa [#allocation7], 1 }
 0x1ba   :  { %189 = vsyncpa [#allocation5], 1 }

</bundles_post_ra>
